<compile_context>
chip_gen: v5e
topology: v5e:2x2
jax: 0.10.0
libtpu: 0.0.40
codegen_flags: <defaults>
</compile_context>

<pallas_src>
import functools

import jax
import jax.numpy as jnp
from jax.experimental import pallas as pl
from jax.experimental.pallas import tpu as pltpu


def _round_up(x, m):
    return ((x + m - 1) // m) * m


def _device_defaults():
    """Generation-specific (tile_m, tile_h, vmem_limit_bytes)."""
    try:
        kind = jax.devices()[0].device_kind.lower()
    except Exception:  # pragma: no cover - defensive
        kind = ""
    if "v7" in kind:
        # 64 MiB physical VMEM per TC -> leave headroom; MXU is 2x256^2.
        return {"tile_m": 512, "tile_h": 256, "vmem_limit_bytes": 48 * 1024 * 1024}
    if "v6" in kind:
        # compute-bound needs tm >= ~680 when weights are re-streamed per tile.
        return {"tile_m": 1024, "tile_h": 512, "vmem_limit_bytes": 100 * 1024 * 1024}
    if "v5" in kind:
        # ~240-row roofline; MXU is 4x128^2 -> 128-aligned tiles.
        return {"tile_m": 256, "tile_h": 256, "vmem_limit_bytes": 100 * 1024 * 1024}
    return {"tile_m": 256, "tile_h": 256, "vmem_limit_bytes": 64 * 1024 * 1024}


def _pad_last2(a, rows, cols):
    pr = rows - a.shape[-2]
    pc = cols - a.shape[-1]
    if pr == 0 and pc == 0:
        return a
    return jnp.pad(a, ((0, 0), (0, pr), (0, pc)))


def _gated_mlp_stack_kernel(x_ref, wg_ref, bg_ref, wv_ref, bv_ref, wo_ref, bo_ref,
                            o_ref, act_ref, acc_ref, *, beta):
    """Fused gated-MLP stack over one row tile; grid = (row_tiles, n_layers, h_tiles)."""
    layer = pl.program_id(1)
    kt = pl.program_id(2)
    n_layers = pl.num_programs(1)
    n_kt = pl.num_programs(2)

    # First step for this row tile: load input rows into the resident bf16 scratch.
    @pl.when((layer == 0) & (kt == 0))
    def _():
        act_ref[...] = x_ref[...].astype(jnp.bfloat16)

    # New layer: zero the output-projection accumulator.
    @pl.when(kt == 0)
    def _():
        acc_ref[...] = jnp.zeros_like(acc_ref)

    x_bf = act_ref[...]  # (tm, d_pad) bf16, MXU LHS for both gate and value dots.

    # Gate / value GEMMs on the current hidden-dim slice: (tm, d) @ (d, th).
    g = jnp.dot(x_bf, wg_ref[...], preferred_element_type=jnp.float32) + bg_ref[...]
    v = jnp.dot(x_bf, wv_ref[...], preferred_element_type=jnp.float32) + bv_ref[...]

    # Swish / SiLU in f32 (sigmoid lands on the EUP slot).
    if beta == 1.0:
        g = g * jax.nn.sigmoid(g)
    else:
        g = g * jax.nn.sigmoid(beta * g)

    h = (g * v).astype(jnp.bfloat16)

    # Output projection partial sum: (tm, th) @ (th, d), f32 accumulate.
    acc_ref[...] += jnp.dot(h, wo_ref[...], preferred_element_type=jnp.float32)

    # Finalize the layer on the last hidden-dim tile.
    @pl.when(kt == n_kt - 1)
    def _():
        y = acc_ref[...] + bo_ref[...]

        @pl.when(layer < n_layers - 1)          # keep resident for the next layer
        def _():
            act_ref[...] = y.astype(jnp.bfloat16)

        @pl.when(layer == n_layers - 1)         # only the last layer writes HBM
        def _():
            o_ref[...] = y.astype(o_ref.dtype)


def gated_mlp_forward(x, params, *, beta=1.0, tile_m=None, tile_h=None,
                      vmem_limit_bytes=None):
    """x: (batch, seq, model_dim) -> same shape. params from init_params()."""
    wg, bg, wv, bv, wo, bo = params
    n_layers, d, h = wg.shape

    b, s, _ = x.shape
    n = b * s

    defaults = _device_defaults()
    tile_m = tile_m or defaults["tile_m"]
    tile_h = tile_h or defaults["tile_h"]
    vmem_limit_bytes = vmem_limit_bytes or defaults["vmem_limit_bytes"]

    # Lane-align the feature dims.
    d_pad = _round_up(d, 128)
    th = max(128, min(_round_up(tile_h, 128), _round_up(h, 128)))
    tm = max(8, min(_round_up(tile_m, 8), _round_up(n, 8)))

    # VMEM guardrail: resident bf16 act + f32 acc, double-buffered x/out blocks,
    # and double-buffered bf16 weight slices must fit with headroom.
    in_b = x.dtype.itemsize
    out_b = x.dtype.itemsize

    def vmem_est(tm_, th_):
        return (tm_ * d_pad * (2 + 4 + 2 * (in_b + out_b)) + 12 * d_pad * th_)

    budget = int(0.75 * vmem_limit_bytes)
    while vmem_est(tm, th) > budget and th > 256:
        th = max(256, th // 2)
    while vmem_est(tm, th) > budget and tm > 256:
        tm = max(256, _round_up(tm // 2, 8))
    while vmem_est(tm, th) > budget and th > 128:
        th = max(128, th // 2)

    h_pad = _round_up(h, th)
    n_pad = _round_up(n, tm)

    # Zero-pad inputs / weights (exact: see padding note at top).
    x2d = x.reshape(n, d)
    if (n_pad, d_pad) != (n, d):
        x2d = jnp.pad(x2d, ((0, n_pad - n), (0, d_pad - d)))
    wg_p = _pad_last2(wg, d_pad, h_pad)
    wv_p = _pad_last2(wv, d_pad, h_pad)
    bg_p = _pad_last2(bg, 1, h_pad)
    bv_p = _pad_last2(bv, 1, h_pad)
    wo_p = _pad_last2(wo, h_pad, d_pad)
    bo_p = _pad_last2(bo, 1, d_pad)

    grid = (n_pad // tm, n_layers, h_pad // th)
    n_row_tiles = grid[0]

    flops = 6 * n_layers * n_pad * d_pad * h_pad          # 2*N*D*H (gate+val) + 2*N*H*D (out)
    transcendentals = n_layers * n_pad * h_pad             # one sigmoid per gate element
    weight_bytes = ((wg_p.size + wv_p.size + wo_p.size) * wg_p.dtype.itemsize
                    + (bg_p.size + bv_p.size + bo_p.size) * bg_p.dtype.itemsize)
    bytes_accessed = int(n_pad * d_pad * (x2d.dtype.itemsize + x.dtype.itemsize)
                         + n_row_tiles * weight_bytes)     # weights re-streamed per row tile

    kernel = functools.partial(_gated_mlp_stack_kernel, beta=beta)

    out = pl.pallas_call(
        kernel,
        out_shape=jax.ShapeDtypeStruct((n_pad, d_pad), x.dtype),
        grid_spec=pltpu.PrefetchScalarGridSpec(
            num_scalar_prefetch=0,
            grid=grid,
            in_specs=[
                pl.BlockSpec((tm, d_pad), lambda i, l, k: (i, 0)),            # x rows (resident)
                pl.BlockSpec((None, d_pad, th), lambda i, l, k: (l, 0, k)),   # W_gate slice (bf16)
                pl.BlockSpec((None, 1, th), lambda i, l, k: (l, 0, k)),       # b_gate slice (f32)
                pl.BlockSpec((None, d_pad, th), lambda i, l, k: (l, 0, k)),   # W_val slice (bf16)
                pl.BlockSpec((None, 1, th), lambda i, l, k: (l, 0, k)),       # b_val slice (f32)
                pl.BlockSpec((None, th, d_pad), lambda i, l, k: (l, k, 0)),   # W_out slice (bf16)
                pl.BlockSpec((None, 1, d_pad), lambda i, l, k: (l, 0, 0)),    # b_out (f32)
            ],
            out_specs=pl.BlockSpec((tm, d_pad), lambda i, l, k: (i, 0)),
            scratch_shapes=[
                pltpu.VMEM((tm, d_pad), jnp.bfloat16),   # resident activation (bf16 MXU LHS)
                pltpu.VMEM((tm, d_pad), jnp.float32),    # output-projection accumulator
            ],
        ),
        compiler_params=pltpu.CompilerParams(
            dimension_semantics=("parallel", "arbitrary", "arbitrary"),
            vmem_limit_bytes=vmem_limit_bytes,
        ),
        cost_estimate=pl.CostEstimate(
            flops=flops,
            transcendentals=transcendentals,
            bytes_accessed=bytes_accessed,
        ),
    )(x2d, wg_p, bg_p, wv_p, bv_p, wo_p, bo_p)

    return out[:n, :d].reshape(b, s, d)


def init_params(key, model_dim, hid_dim, n_layers, weight_dtype=jnp.bfloat16):
    """torch.nn.Linear-style uniform init, weights stacked over layers.

    Returns (wg, bg, wv, bv, wo, bo):
      wg: (L, D, H) weight_dtype   bg: (L, 1, H) f32
      wv: (L, D, H) weight_dtype   bv: (L, 1, H) f32
      wo: (L, H, D) weight_dtype   bo: (L, 1, D) f32
    """
    lim_in = 1.0 / (model_dim ** 0.5)
    lim_hid = 1.0 / (hid_dim ** 0.5)
    wgs, bgs, wvs, bvs, wos, bos = [], [], [], [], [], []
    for _ in range(n_layers):
        key, k1, k2, k3, k4, k5, k6 = jax.random.split(key, 7)
        wgs.append(jax.random.uniform(k1, (model_dim, hid_dim), jnp.float32, -lim_in, lim_in))
        bgs.append(jax.random.uniform(k2, (1, hid_dim), jnp.float32, -lim_in, lim_in))
        wvs.append(jax.random.uniform(k3, (model_dim, hid_dim), jnp.float32, -lim_in, lim_in))
        bvs.append(jax.random.uniform(k4, (1, hid_dim), jnp.float32, -lim_in, lim_in))
        wos.append(jax.random.uniform(k5, (hid_dim, model_dim), jnp.float32, -lim_hid, lim_hid))
        bos.append(jax.random.uniform(k6, (1, model_dim), jnp.float32, -lim_hid, lim_hid))
    wg = jnp.stack(wgs).astype(weight_dtype)
    wv = jnp.stack(wvs).astype(weight_dtype)
    wo = jnp.stack(wos).astype(weight_dtype)
    return wg, jnp.stack(bgs), wv, jnp.stack(bvs), wo, jnp.stack(bos)


def _reference_forward(x, params, beta=1.0):
    """Pure-JAX reference mirroring the kernel's bf16-operand / f32-accumulate math."""
    wg, bg, wv, bv, wo, bo = params
    n_layers, d, _ = wg.shape
    b, s, _ = x.shape
    y = x.reshape(b * s, d).astype(jnp.float32)
    for l in range(n_layers):
        xb = y.astype(wg.dtype)
        g = jnp.dot(xb, wg[l], preferred_element_type=jnp.float32) + bg[l]
        v = jnp.dot(xb, wv[l], preferred_element_type=jnp.float32) + bv[l]
        g = g * jax.nn.sigmoid(beta * g)
        y = jnp.dot((g * v).astype(wo.dtype), wo[l],
                    preferred_element_type=jnp.float32) + bo[l]
    return y.reshape(b, s, d).astype(x.dtype)


if __name__ == "__main__":
    # Small shapes: batch=2, seq=8, model_dim=32, hid_dim=64, n_layers=2.
    batch, seq, model_dim, hid_dim, n_layers = 2, 8, 32, 64, 2
    beta = 1.0  # activation="silu"

    key = jax.random.PRNGKey(0)
    key, xk = jax.random.split(key)
    x = jax.random.normal(xk, (batch, seq, model_dim), dtype=jnp.float32)

    params = init_params(key, model_dim, hid_dim, n_layers)

    out = gated_mlp_forward(x, params, beta=beta)
    out = jax.block_until_ready(out)

    ref = _reference_forward(x, params, beta=beta)
    assert out.shape == x.shape
    max_err = float(jnp.max(jnp.abs(out - ref)))
    assert jnp.allclose(out, ref, atol=1e-2, rtol=1e-2), f"mismatch vs reference: {max_err}"

    print("KERNEL_OK")
</pallas_src>

<mosaic_0001>
module attributes {stable_mosaic.version = 11 : i64} {
  func.func @_gated_mlp_stack_kernel(%arg0: i32, %arg1: i32, %arg2: i32, %arg3: memref<16x128xf32, #tpu.memory_space<vmem>>, %arg4: memref<1x128x128xbf16, #tpu.memory_space<vmem>>, %arg5: memref<1x1x128xf32, #tpu.memory_space<vmem>>, %arg6: memref<1x128x128xbf16, #tpu.memory_space<vmem>>, %arg7: memref<1x1x128xf32, #tpu.memory_space<vmem>>, %arg8: memref<1x128x128xbf16, #tpu.memory_space<vmem>>, %arg9: memref<1x1x128xf32, #tpu.memory_space<vmem>>, %arg10: memref<16x128xf32, #tpu.memory_space<vmem>>, %arg11: memref<16x128xbf16, #tpu.memory_space<vmem>>, %arg12: memref<16x128xf32, #tpu.memory_space<vmem>>) attributes {dimension_semantics = [#tpu.dimension_semantics<parallel>, #tpu.dimension_semantics<arbitrary>, #tpu.dimension_semantics<arbitrary>], iteration_bounds = array<i64: 1, 2, 1>, scalar_prefetch = 0 : i64, scratch_operands = 2 : i64, tpu.core_type = #tpu.core_type<tc>, window_params = [{transform_indices = @transform_0, window_bounds = array<i64: 16, 128>}, {transform_indices = @transform_1, window_bounds = array<i64: 1, 128, 128>}, {transform_indices = @transform_2, window_bounds = array<i64: 1, 1, 128>}, {transform_indices = @transform_3, window_bounds = array<i64: 1, 128, 128>}, {transform_indices = @transform_4, window_bounds = array<i64: 1, 1, 128>}, {transform_indices = @transform_5, window_bounds = array<i64: 1, 128, 128>}, {transform_indices = @transform_6, window_bounds = array<i64: 1, 1, 128>}, {transform_indices = @transform_7, window_bounds = array<i64: 16, 128>}]} {
    %c0_i32 = arith.constant 0 : i32
    %0 = arith.cmpi eq, %arg1, %c0_i32 : i32
    %c0_i32_0 = arith.constant 0 : i32
    %1 = arith.cmpi eq, %arg2, %c0_i32_0 : i32
    %2 = arith.andi %0, %1 : i1
    %3 = arith.extui %2 : i1 to i32
    %c0_i32_1 = arith.constant 0 : i32
    %4 = arith.cmpi ne, %3, %c0_i32_1 : i32
    scf.if %4 {
      %c0_29 = arith.constant 0 : index
      %c0_30 = arith.constant 0 : index
      %40 = vector.load %arg3[%c0_29, %c0_30] : memref<16x128xf32, #tpu.memory_space<vmem>>, vector<16x128xf32>
      %41 = arith.truncf %40 : vector<16x128xf32> to vector<16x128xbf16>
      %c0_31 = arith.constant 0 : index
      %c0_32 = arith.constant 0 : index
      %42 = vector.load %arg11[%c0_31, %c0_32] : memref<16x128xbf16, #tpu.memory_space<vmem>>, vector<16x128xbf16>
      tpu.vector_store %arg11[%c0_31, %c0_32], %41 {strides = array<i32>} : memref<16x128xbf16, #tpu.memory_space<vmem>>, vector<16x128xbf16>,
    } else {
    }
    %c0_i32_2 = arith.constant 0 : i32
    %5 = arith.cmpi eq, %arg2, %c0_i32_2 : i32
    %6 = arith.extui %5 : i1 to i32
    %c0_i32_3 = arith.constant 0 : i32
    %7 = arith.cmpi ne, %6, %c0_i32_3 : i32
    scf.if %7 {
      %cst_29 = arith.constant 0.000000e+00 : f32
      %40 = vector.broadcast %cst_29 : f32 to vector<16x128xf32>
      %c0_30 = arith.constant 0 : index
      %c0_31 = arith.constant 0 : index
      %41 = vector.load %arg12[%c0_30, %c0_31] : memref<16x128xf32, #tpu.memory_space<vmem>>, vector<16x128xf32>
      tpu.vector_store %arg12[%c0_30, %c0_31], %40 {strides = array<i32>} : memref<16x128xf32, #tpu.memory_space<vmem>>, vector<16x128xf32>,
    } else {
    }
    %c0 = arith.constant 0 : index
    %c0_4 = arith.constant 0 : index
    %8 = vector.load %arg11[%c0, %c0_4] : memref<16x128xbf16, #tpu.memory_space<vmem>>, vector<16x128xbf16>
    %c0_5 = arith.constant 0 : index
    %c0_6 = arith.constant 0 : index
    %c0_7 = arith.constant 0 : index
    %9 = vector.load %arg4[%c0_5, %c0_6, %c0_7] : memref<1x128x128xbf16, #tpu.memory_space<vmem>>, vector<1x128x128xbf16>
    %10 = vector.shape_cast %9 : vector<1x128x128xbf16> to vector<128x128xbf16>
    %cst = arith.constant dense<0.000000e+00> : vector<16x128xf32>
    %11 = tpu.matmul %8, %10, %cst {dimension_numbers = #tpu.dot_dimension_numbers<[1], [0], [0], [1], [0, 0, 1, 1], [], []>} : vector<16x128xbf16>, vector<128x128xbf16>, vector<16x128xf32> -> vector<16x128xf32>
    %c0_8 = arith.constant 0 : index
    %c0_9 = arith.constant 0 : index
    %c0_10 = arith.constant 0 : index
    %12 = vector.load %arg5[%c0_8, %c0_9, %c0_10] : memref<1x1x128xf32, #tpu.memory_space<vmem>>, vector<1x1x128xf32>
    %13 = vector.shape_cast %12 : vector<1x1x128xf32> to vector<1x128xf32>
    %14 = vector.broadcast %13 : vector<1x128xf32> to vector<16x128xf32>
    %15 = arith.addf %11, %14 : vector<16x128xf32>
    %c0_11 = arith.constant 0 : index
    %c0_12 = arith.constant 0 : index
    %c0_13 = arith.constant 0 : index
    %16 = vector.load %arg6[%c0_11, %c0_12, %c0_13] : memref<1x128x128xbf16, #tpu.memory_space<vmem>>, vector<1x128x128xbf16>
    %17 = vector.shape_cast %16 : vector<1x128x128xbf16> to vector<128x128xbf16>
    %cst_14 = arith.constant dense<0.000000e+00> : vector<16x128xf32>
    %18 = tpu.matmul %8, %17, %cst_14 {dimension_numbers = #tpu.dot_dimension_numbers<[1], [0], [0], [1], [0, 0, 1, 1], [], []>} : vector<16x128xbf16>, vector<128x128xbf16>, vector<16x128xf32> -> vector<16x128xf32>
    %c0_15 = arith.constant 0 : index
    %c0_16 = arith.constant 0 : index
    %c0_17 = arith.constant 0 : index
    %19 = vector.load %arg7[%c0_15, %c0_16, %c0_17] : memref<1x1x128xf32, #tpu.memory_space<vmem>>, vector<1x1x128xf32>
    %20 = vector.shape_cast %19 : vector<1x1x128xf32> to vector<1x128xf32>
    %21 = vector.broadcast %20 : vector<1x128xf32> to vector<16x128xf32>
    %22 = arith.addf %18, %21 : vector<16x128xf32>
    %23 = arith.negf %15 : vector<16x128xf32>
    %24 = math.exp %23 : vector<16x128xf32>
    %cst_18 = arith.constant 1.000000e+00 : f32
    %25 = vector.broadcast %cst_18 : f32 to vector<16x128xf32>
    %26 = arith.addf %25, %24 : vector<16x128xf32>
    %27 = arith.divf %25, %26 : vector<16x128xf32>
    %28 = arith.mulf %15, %27 : vector<16x128xf32>
    %29 = arith.mulf %28, %22 : vector<16x128xf32>
    %30 = arith.truncf %29 : vector<16x128xf32> to vector<16x128xbf16>
    %c0_19 = arith.constant 0 : index
    %c0_20 = arith.constant 0 : index
    %31 = vector.load %arg12[%c0_19, %c0_20] : memref<16x128xf32, #tpu.memory_space<vmem>>, vector<16x128xf32>
    %c0_21 = arith.constant 0 : index
    %c0_22 = arith.constant 0 : index
    %c0_23 = arith.constant 0 : index
    %32 = vector.load %arg8[%c0_21, %c0_22, %c0_23] : memref<1x128x128xbf16, #tpu.memory_space<vmem>>, vector<1x128x128xbf16>
    %33 = vector.shape_cast %32 : vector<1x128x128xbf16> to vector<128x128xbf16>
    %cst_24 = arith.constant dense<0.000000e+00> : vector<16x128xf32>
    %34 = tpu.matmul %30, %33, %cst_24 {dimension_numbers = #tpu.dot_dimension_numbers<[1], [0], [0], [1], [0, 0, 1, 1], [], []>} : vector<16x128xbf16>, vector<128x128xbf16>, vector<16x128xf32> -> vector<16x128xf32>
    %35 = arith.addf %31, %34 : vector<16x128xf32>
    %c0_25 = arith.constant 0 : index
    %c0_26 = arith.constant 0 : index
    %36 = vector.load %arg12[%c0_25, %c0_26] : memref<16x128xf32, #tpu.memory_space<vmem>>, vector<16x128xf32>
    tpu.vector_store %arg12[%c0_25, %c0_26], %35 {strides = array<i32>} : memref<16x128xf32, #tpu.memory_space<vmem>>, vector<16x128xf32>,
    %c0_i32_27 = arith.constant 0 : i32
    %37 = arith.cmpi eq, %arg2, %c0_i32_27 : i32
    %38 = arith.extui %37 : i1 to i32
    %c0_i32_28 = arith.constant 0 : i32
    %39 = arith.cmpi ne, %38, %c0_i32_28 : i32
    scf.if %39 {
      %c0_29 = arith.constant 0 : index
      %c0_30 = arith.constant 0 : index
      %40 = vector.load %arg12[%c0_29, %c0_30] : memref<16x128xf32, #tpu.memory_space<vmem>>, vector<16x128xf32>
      %c0_31 = arith.constant 0 : index
      %c0_32 = arith.constant 0 : index
      %c0_33 = arith.constant 0 : index
      %41 = vector.load %arg9[%c0_31, %c0_32, %c0_33] : memref<1x1x128xf32, #tpu.memory_space<vmem>>, vector<1x1x128xf32>
      %42 = vector.shape_cast %41 : vector<1x1x128xf32> to vector<1x128xf32>
      %43 = vector.broadcast %42 : vector<1x128xf32> to vector<16x128xf32>
      %44 = arith.addf %40, %43 : vector<16x128xf32>
      %c1_i32 = arith.constant 1 : i32
      %45 = arith.cmpi slt, %arg1, %c1_i32 : i32
      %46 = arith.extui %45 : i1 to i32
      %c0_i32_34 = arith.constant 0 : i32
      %47 = arith.cmpi ne, %46, %c0_i32_34 : i32
      scf.if %47 {
        %51 = arith.truncf %44 : vector<16x128xf32> to vector<16x128xbf16>
        %c0_37 = arith.constant 0 : index
        %c0_38 = arith.constant 0 : index
        %52 = vector.load %arg11[%c0_37, %c0_38] : memref<16x128xbf16, #tpu.memory_space<vmem>>, vector<16x128xbf16>
        tpu.vector_store %arg11[%c0_37, %c0_38], %51 {strides = array<i32>} : memref<16x128xbf16, #tpu.memory_space<vmem>>, vector<16x128xbf16>,
      } else {
      }
      %c1_i32_35 = arith.constant 1 : i32
      %48 = arith.cmpi eq, %arg1, %c1_i32_35 : i32
      %49 = arith.extui %48 : i1 to i32
      %c0_i32_36 = arith.constant 0 : i32
      %50 = arith.cmpi ne, %49, %c0_i32_36 : i32
      scf.if %50 {
        %c0_37 = arith.constant 0 : index
        %c0_38 = arith.constant 0 : index
        %51 = vector.load %arg10[%c0_37, %c0_38] : memref<16x128xf32, #tpu.memory_space<vmem>>, vector<16x128xf32>
        tpu.vector_store %arg10[%c0_37, %c0_38], %44 {strides = array<i32>} : memref<16x128xf32, #tpu.memory_space<vmem>>, vector<16x128xf32>,
      } else {
      }
    } else {
    }
    return
  }
  func.func @transform_0(%arg0: i32, %arg1: i32, %arg2: i32) -> (i32, i32) {
    %c0_i32 = arith.constant 0 : i32
    %c0_i32_0 = arith.constant 0 : i32
    return %arg0, %c0_i32 : i32, i32
  }
  func.func @transform_1(%arg0: i32, %arg1: i32, %arg2: i32) -> (i32, i32, i32) {
    %c0_i32 = arith.constant 0 : i32
    %c0_i32_0 = arith.constant 0 : i32
    return %arg1, %c0_i32, %arg2 : i32, i32, i32
  }
  func.func @transform_2(%arg0: i32, %arg1: i32, %arg2: i32) -> (i32, i32, i32) {
    %c0_i32 = arith.constant 0 : i32
    %c0_i32_0 = arith.constant 0 : i32
    return %arg1, %c0_i32, %arg2 : i32, i32, i32
  }
  func.func @transform_3(%arg0: i32, %arg1: i32, %arg2: i32) -> (i32, i32, i32) {
    %c0_i32 = arith.constant 0 : i32
    %c0_i32_0 = arith.constant 0 : i32
    return %arg1, %c0_i32, %arg2 : i32, i32, i32
  }
  func.func @transform_4(%arg0: i32, %arg1: i32, %arg2: i32) -> (i32, i32, i32) {
    %c0_i32 = arith.constant 0 : i32
    %c0_i32_0 = arith.constant 0 : i32
    return %arg1, %c0_i32, %arg2 : i32, i32, i32
  }
  func.func @transform_5(%arg0: i32, %arg1: i32, %arg2: i32) -> (i32, i32, i32) {
    %c0_i32 = arith.constant 0 : i32
    %c0_i32_0 = arith.constant 0 : i32
    return %arg1, %arg2, %c0_i32 : i32, i32, i32
  }
  func.func @transform_6(%arg0: i32, %arg1: i32, %arg2: i32) -> (i32, i32, i32) {
    %c0_i32 = arith.constant 0 : i32
    %c0_i32_0 = arith.constant 0 : i32
    %c0_i32_1 = arith.constant 0 : i32
    return %arg1, %c0_i32, %c0_i32_0 : i32, i32, i32
  }
  func.func @transform_7(%arg0: i32, %arg1: i32, %arg2: i32) -> (i32, i32) {
    %c0_i32 = arith.constant 0 : i32
    %c0_i32_0 = arith.constant 0 : i32
    return %arg0, %c0_i32 : i32, i32
  }
}

</mosaic_0001>

<bundles_post_ra>
// kernel: tpu_custom_call.1
= control target key start
LH: loop header
LB: loop body
LE: loop exit
PB: predicated region body
PF: predicated region fallthrough
CT: control target
= control target key end

     0   :  { %s1817_s0 = inlined_call_operand.hbm [shape: f32[16,128], index: 0, kind: input, shape index: {}]   ;;  %s1818_s1 = inlined_call_operand.hbm [shape: bf16[2,128,128], index: 1, kind: input, shape index: {}]   ;;  %s1819_s2 = inlined_call_operand.hbm [shape: f32[2,1,128], index: 2, kind: input, shape index: {}]   ;;  %s1820_s3 = inlined_call_operand.hbm [shape: bf16[2,128,128], index: 3, kind: input, shape index: {}]   ;;  %s1821_s4 = inlined_call_operand.vmem [shape: f32[2,1,128], index: 4, kind: input, shape index: {}]   ;;  %s1822_s5 = inlined_call_operand.hbm [shape: bf16[2,128,128], index: 5, kind: input, shape index: {}]   ;;  %s1823_s6 = inlined_call_operand.vmem [shape: f32[2,1,128], index: 6, kind: input, shape index: {}]   ;;  %s1824_s7 = inlined_call_operand.hbm [shape: f32[16,128], index: 7, kind: output, shape index: {}]  }
   0x1   :  { %1830 = sst [smem:[#allocation21_spill]] %s1817_s0 }
   0x2   :  { %1831 = sst [smem:[#allocation22_spill]] %s1818_s1 }
   0x3   :  { %1832 = sst [smem:[#allocation23_spill]] %s1820_s3 }
   0x4   :  { %1833 = sst [smem:[#allocation24_spill]] %s1824_s7 }
   0x5   :  { %12 = vsyncpa [#allocation5], 0 }
   0x6   :  { %13 = vsyncpa [#allocation8], 0 }
   0x7   :  { %15 = vsyncpa [#allocation8 + $0x1], 0 }
   0x8   :  { %16 = vsyncpa [#allocation11], 0 }
   0x9   :  { %18 = vsyncpa [#allocation11 + $0x1], 0 }
   0xa   :  { %19 = vsyncpa [#allocation6], 0  ;;  %s1586_s24 = smov 0   ;;  %s1588_s25 = smov 0  }
   0xb   :  { %s1590_s26 = smov 0   ;;  %s1592_s27 = smov 0  }
   0xc   :  { %s1594_s28 = smov 0   ;;  %s1596_s29 = smov 0  }
   0xd LB: > { %1834 = sst [smem:[#allocation18_spill]] %s1536_s29  ;;  %s40_s30 = sadd.s32 1, %s1532_s28  ;;  %s1536_s29 = sphi %s1596_s29, %s25_s29   ;;  %s1532_s28 = sphi %s1594_s28, %s1855_s28   ;;  %s1528_s27 = sphi %s1592_s27, %s1854_s27   ;;  %s1524_s26 = sphi %s1590_s26, %s1853_s26   ;;  %s1520_s25 = sphi %s1588_s25, %s1852_s25   ;;  %s1516_s24 = sphi %s1586_s24, %s1851_s24  }
   0xe   : > { %s79_s8 = sadd.s32 1, %s1524_s26  ;;  %p42_p0 = scmp.ge.s32.totalorder %s40_s30, 2 }
   0xf   : > { %p86_p1 = scmp.ne.s32.totalorder %s1524_s26, %s1520_s25  ;;  %p87_p2 = scmp.eq.s32.totalorder %s1536_s29, 0 }
  0x10   : > { %s1857_s30 = smov (%p42_p0, %s40_s30), 0  ;;  %p1225_p4 = scmp.lt.s32.totalorder %s1536_s29, 2 }
  0x11   : > { %1835 = sst [smem:[#allocation19_spill]] %s1857_s30  ;;  %p1623_p3 = por %p87_p2, %p86_p1 }
  0x12   : > { %s74_s10 = ssub.s32 %s1532_s28, %s1857_s30  ;;  %s297_s11 = sand.u32 1, %s1536_s29  }
  0x13   : > { %p77_p5 = scmp.eq.s32.totalorder %s74_s10, 0  ;;  %s1825_s12 = sand.u32 1, %s1524_s26  }
  0x14   : > { %s1633_s13 = sshll.u32 %s1532_s28, 6  ;;  %s1640_s15 = sshll.u32 %s1825_s12, 6 }
  0x15   : > { %s1636_s14 = scalar_select %p77_p5, %s1524_s26, %s79_s8  }
  0x16   : > { %s1838_s1 = sld [smem:[#allocation22_spill]]  ;;  %s301_s20 = scalar_lea.vmem [#allocation7], %s1640_s15 }
  0x17   : > { %1837 = sst [smem:[#allocation20_spill]] %s1636_s14  ;;  %s310_s21 = sshll.u32 %s301_s20, 4  ;;  %s311_s21 = int_to_ptr.vmem [resolvable:$true] %s310_s21 }
  0x18   : > { %p1651_p6 = pnand %p1225_p4, %p1623_p3  ;;  %s1655_s23 = scalar_lea.sflag [#allocation8], %s297_s11 }
  0x19   : > { %s1826_s8 = smov 64   ;;  %s1827_s10 = smov 4  }
  0x1a   : > { %s1840_s3 = sld [smem:[#allocation23_spill]]  ;;  %s342_s20 = scalar_lea.vmem [#allocation10], %s1640_s15 }
  0x1b   : > { %s351_s12 = sshll.u32 %s342_s20, 4  ;;  %p92_p7 = scmp.ne.s32.totalorder %s1520_s25, %s1516_s24  ;;  %s352_s12 = int_to_ptr.vmem [resolvable:$true] %s351_s12 }
  0x1c   : > { %s307_s18 = scalar_lea.hbm %s1838_s1, %s1633_s13  ;;  %s1668_s1 = scalar_lea.sflag [#allocation11], %s297_s11 }
  0x1d   : > { %s308_s19 = sshll.u32 %s307_s18, 4  ;;  %p1026_p9 = scmp.ge.s32.totalorder %s1536_s29, 1  ;;  %s309_s19 = int_to_ptr.hbm [resolvable:$true] %s308_s19 }
  0x1e   : > { %1214 = dma.hbm_to_vmem [thread:$0]  (!%p1651_p6), %s309_s19, 1024, %s311_s21, %s1655_s23, %s1826_s8, %s1826_s8, %s1827_s10  }
  0x1f   : > { %s1677_s19 = sadd.s32 4294967295, %s1536_s29   ;;  %p267_p10 = scmp.lt.s32.totalorder %s1536_s29, 3 }
  0x20   : > { %s348_s17 = scalar_lea.hbm %s1840_s3, %s1633_s13  ;;  %p93_p8 = scmp.eq.s32.totalorder %s1677_s19, 0 }
  0x21   : > { %s349_s18 = sshll.u32 %s348_s17, 4  ;;  %s1842_s0 = sld [smem:[#allocation21_spill]]  ;;  %s350_s18 = int_to_ptr.hbm [resolvable:$true] %s349_s18 }
  0x22   : > { %1220 = dma.hbm_to_vmem [thread:$0]  (!%p1651_p6), %s350_s18, 1024, %s352_s12, %s1668_s1, %s1826_s8, %s1826_s8, %s1827_s10  }
  0x23   : > { %p1686_p11 = por %p93_p8, %p92_p7  ;;  %p1693_p12 = pnand %p1026_p9, %p267_p10 }
  0x24   : > { %s1540_s24 = smov [#allocation4]   ;;  %s327_s21 = scalar_lea.hbm %s1819_s2, %s1532_s28 }
  0x25   : > { %p1207_p13 = pneg %p1693_p12  ;;  %s283_s17 = sshll.u32 %s1540_s24, 4  ;;  %s284_s17 = int_to_ptr.vmem [resolvable:$true] %s283_s17 }
  0x26   : > { %s1844_s9 = sand.u32 1, %s1524_s26   ;;  %s1541_s3 = smov 128  }
  0x27   : > { %s281_s16 = sshll.u32 %s1842_s0, 4  ;;  %p1208_p0 = pnand %p1207_p13, %p93_p8  ;;  %s282_s16 = int_to_ptr.hbm [resolvable:$true] %s281_s16 }
  0x28   : > { %s323_s8 = scalar_lea.vmem [#allocation9], %s1844_s9  ;;  %s329_s0 = sshll.u32 %s327_s21, 4  ;;  %s330_s0 = int_to_ptr.hbm [resolvable:$true] %s329_s0 }
  0x29   : > { %s331_s10 = sshll.u32 %s323_s8, 4  ;;  %s1542_s30 = smov 8   ;;  %s332_s10 = int_to_ptr.vmem [resolvable:$true] %s331_s10 }
  0x2a   : > { %1210 = dma.hbm_to_vmem [thread:$0]  (!%p1208_p0), %s282_s16, 256, %s284_s17, [#allocation5], %s1541_s3, %s1541_s3, %s1542_s30  }
  0x2b   : > { %1217 = dma.hbm_to_vmem [thread:$0]  (!%p1651_p6), %s330_s0, 16, %s332_s10, %s1655_s23  }
  0x2c   : > { %s381_s29 = scalar_lea.hbm %s1822_s5, %s1633_s13  ;;  %s374_s18 = scalar_lea.vmem [#allocation12], %s1640_s15 }
  0x2d   : > { %s382_s7 = sshll.u32 %s381_s29, 4  ;;  %s384_s20 = sshll.u32 %s374_s18, 4  ;;  %s383_s7 = int_to_ptr.hbm [resolvable:$true] %s382_s7  ;;  %s385_s20 = int_to_ptr.vmem [resolvable:$true] %s384_s20 }
  0x2e   : > { %s1845_s9 = smov 4   ;;  %s1846_s8 = smov 64  }
  0x2f   : > { %1223 = dma.hbm_to_vmem [thread:$0]  (!%p1651_p6), %s383_s7, 1024, %s385_s20, %s1668_s1, %s1846_s8, %s1846_s8, %s1845_s9  }
  0x30   : > { %402 = sbr.rel (%p1693_p12) target bundleno = 435 (0x1b3), region = 48 }
  0x35   : > { %1499 = dma.done.wait (%p93_p8), [#allocation5], 256  }
  0x36   : > { %1501 = vsyncadd (%p93_p8), [#allocation5], 4294967040  ;;  %s409_s0 = sand.u32 1, %s1677_s19   ;;  %s411_s3 = sand.u32 1, %s1520_s25  }
  0x37   : > { %s1040_s29 = sshll.u32 %s411_s3, 6  ;;  %s410_s30 = scalar_lea.sflag [#allocation8], %s409_s0 }
  0x38   : > { %s1729_s13 = scalar_lea.vmem [#allocation7], %s1040_s29 }
  0x39   : > { %1503 = dma.done.wait (%p1686_p11), %s410_s30, 1040  }
  0x3a   : > { %1505 = vsyncadd (%p1686_p11), %s410_s30, 4294966256  ;;  %s1735_s1 = scalar_lea.vmem [#allocation9], %s411_s3  ;;  %s429_s7 = scalar_lea.sflag [#allocation11], %s409_s0 }
  0x3b   : > { %s1737_s14 = scalar_lea.vmem [#allocation10], %s1040_s29 }
  0x3c   : > { %1507 = dma.done.wait (%p1686_p11), %s429_s7, 2048  }
  0x3d   : > { %1509 = vsyncadd (%p1686_p11), %s429_s7, 4294965248  ;;  %p493_p1 = scmp.lt.s32.totalorder %s1528_s27, 1  ;;  %p504_p2 = scmp.eq.s32.totalorder %s1528_s27, 0 }
  0x3e   : > { %s1756_s21 = scalar_lea.vmem [#allocation12], %s1040_s29  ;;  %v510_v0 = vld [vmem:[#allocation4] sm:$0xff] (%p504_p2)  ;;  %v511_v1 = vld [vmem:[#allocation4 + $0x8] sm:$0xff] (%p504_p2) }
  0x3f   : > { %s1746_s15 = scalar_select %p493_p1, %s1528_s27, 1  ;;  %v1184_v2 = vpack.c.bf16 (%p504_p2), %v511_v1, %v510_v0 }
  0x40   : > { %509 = sbr.rel (!%p504_p2) target bundleno = 69 (0x45), region = 72 }
  0x41   : > { %s498_s10 = scalar_lea.vmem %s1821_s4, %s1746_s15  ;;  %s502_s17 = scalar_lea.vmem %s1823_s6, %s1746_s15  ;;  %1185 = vst [vmem:[#allocation2] sm:$0xff] (%p504_p2), %v1184_v2  }
  0x45 PF: > { %v1164_v3 = vld [vmem:[%s1729_s13 + $0x38] sm:$0xff]  ;;  %v1163_v4 = vld [vmem:[%s1729_s13 + $0x30] sm:$0xff]  ;;  %v1162_v7 = vld [vmem:[%s1729_s13 + $0x28] sm:$0xff]  ;;  %p1146_p3 = scmp.ge.s32.totalorder %s1528_s27, 1 }
  0x46   : > { %597 = vmatpush.bf16.msra.mxu0 %v1164_v3  ;;  %v1172_v5 = vld [vmem:[%s1737_s14 + $0x38] sm:$0xff]  ;;  %v1171_v6 = vld [vmem:[%s1737_s14 + $0x30] sm:$0xff]  ;;  %v1170_v8 = vld [vmem:[%s1737_s14 + $0x28] sm:$0xff] }
  0x47   : > { %679 = vmatpush.bf16.msra.mxu1 %v1172_v5  ;;  %v1161_v9 = vld [vmem:[%s1729_s13 + $0x20] sm:$0xff]  ;;  %v1160_v11 = vld [vmem:[%s1729_s13 + $0x18] sm:$0xff]  ;;  %v1159_v13 = vld [vmem:[%s1729_s13 + $0x10] sm:$0xff] }
  0x48   : > { %v1169_v10 = vld [vmem:[%s1737_s14 + $0x20] sm:$0xff]  ;;  %v1168_v12 = vld [vmem:[%s1737_s14 + $0x18] sm:$0xff]  ;;  %v1167_v14 = vld [vmem:[%s1737_s14 + $0x10] sm:$0xff] }
  0x49   : > { %v1158_v15 = vld [vmem:[%s1729_s13 + $0x8] sm:$0xff]  ;;  %v1157_v17 = vld [vmem:[%s1729_s13] sm:$0xff]  ;;  %v1179_v21 = vld [vmem:[%s1756_s21 + $0x30] sm:$0xff] }
  0x4a   : > { %598 = vmatpush.bf16.msra.mxu0 %v1163_v4  ;;  %v1166_v16 = vld [vmem:[%s1737_s14 + $0x8] sm:$0xff]  ;;  %v1165_v18 = vld [vmem:[%s1737_s14] sm:$0xff]  ;;  %v1180_v20 = vld [vmem:[%s1756_s21 + $0x38] sm:$0xff] }
  0x4b   : > { %680 = vmatpush.bf16.msra.mxu1 %v1171_v6  ;;  %v1156_v19 = vld [vmem:[#allocation2] sm:$0xff]  ;;  %802 = vmatpush.bf16.msra.mxu2 %v1180_v20  ;;  %v1176_v24 = vld [vmem:[%s1756_s21 + $0x18] sm:$0xff]  ;;  %v1175_v27 = vld [vmem:[%s1756_s21 + $0x10] sm:$0xff] }
  0x4c   : > { %v1178_v22 = vld [vmem:[%s1756_s21 + $0x28] sm:$0xff]  ;;  %v1177_v23 = vld [vmem:[%s1756_s21 + $0x20] sm:$0xff] }
  0x4d   : > { %v1285_v25 = vld [vmem:[%s1735_s1] ss:$0 sm:$0xff]  ;;  %v1174_v30 = vld [vmem:[%s1756_s21 + $0x8] sm:$0xff] }
  0x4e   : > { %599 = vmatpush.bf16.msra.mxu0 %v1162_v7  ;;  %v1173_v32 = vld [vmem:[%s1756_s21] sm:$0xff] }
  0x4f   : > { %681 = vmatpush.bf16.msra.mxu1 %v1170_v8  ;;  %803 = vmatpush.bf16.msra.mxu2 %v1179_v21  ;;  %v1286_v55 = vld [vmem:[%s498_s10] ss:$0 sm:$0xff] }
  0x50   : > { %v1287_v5 = vld [vmem:[%s502_s17] ss:$0 sm:$0xff] }
  0x52   : > { %600 = vmatpush.bf16.msra.mxu0 %v1161_v9 }
  0x53   : > { %682 = vmatpush.bf16.msra.mxu1 %v1169_v10  ;;  %804 = vmatpush.bf16.msra.mxu2 %v1178_v22 }
  0x56   : > { %601 = vmatpush.bf16.msra.mxu0 %v1160_v11 }
  0x57   : > { %683 = vmatpush.bf16.msra.mxu1 %v1168_v12  ;;  %805 = vmatpush.bf16.msra.mxu2 %v1177_v23 }
  0x5a   : > { %602 = vmatpush.bf16.msra.mxu0 %v1159_v13 }
  0x5b   : > { %684 = vmatpush.bf16.msra.mxu1 %v1167_v14  ;;  %806 = vmatpush.bf16.msra.mxu2 %v1176_v24 }
  0x5e   : > { %603 = vmatpush.bf16.msra.mxu0 %v1158_v15 }
  0x5f   : > { %685 = vmatpush.bf16.msra.mxu1 %v1166_v16  ;;  %807 = vmatpush.bf16.msra.mxu2 %v1175_v27 }
  0x62   : > { %604 = vmatpush.bf16.msra.mxu0 %v1157_v17 }
  0x63   : > { %686 = vmatpush.bf16.msra.mxu1 %v1165_v18  ;;  %808 = vmatpush.bf16.msra.mxu2 %v1174_v30 }
  0x65   : > { %605 = vmatmul.bf16.vlgmr.msra.gmra.mxu0 %v1156_v19 }
  0x66   : > { %687 = vmatmul.bf16.vlgmr.msra.gmra.mxu1 %v1156_v19 }
  0x67   : > { %809 = vmatpush.bf16.msra.mxu2 %v1173_v32 }
  0xe2   : > { %v606_v26 = vpop.f32.mrf.mxu0 }
  0xe3   : > { %v607_v28 = vadd.f32 %v1285_v25, %v606_v26  ;;  %v688_v43 = vpop.f32.mrf.mxu1 }
  0xe4   : > { %v689_v62 = vadd.f32 %v1286_v55, %v688_v43 }
  0xe5   : > { %v1112_v29 = vmul.f32 -1.442695, %v607_v28 }
  0xe7   : > { %1288 = vpow2.f32 %v1112_v29 }
  0xea   : > { %v608_v31 = vpop.f32.mrf.mxu0 }
  0xeb   : > { %v609_v33 = vadd.f32 %v1285_v25, %v608_v31  ;;  %v690_v59 = vpop.f32.mrf.mxu1 }
  0xec   : > { %v691_v1 = vadd.f32 %v1286_v55, %v690_v59 }
  0xed   : > { %v1289_v34 = vpop.eup %1288  ;;  %v1113_v35 = vmul.f32 -1.442695, %v609_v33 }
  0xee   : > { %v699_v36 = vadd.f32 1.0, %v1289_v34 }
  0xef   : > { %1290 = vpow2.f32 %v1113_v35 }
  0xf0   : > { %1292 = vrcp.f32 %v699_v36  ;;  %v712_v46 = vand.u32 2147483648, %v699_v36  ;;  %vm706_vm1 = vweird.f32 %v699_v36  ;;  %v710_v47 = vand.u32 2147483647, %v699_v36 }
  0xf2   : > { %v713_v51 = vor.u32 1.1754944e-38, %v712_v46  ;;  %vm711_vm3 = vcmp.eq.f32.partialorder %v710_v47, 8.507059e+37 }
  0xf5   : > { %v1291_v37 = vpop.eup %1290 }
  0xf6   : > { %v1293_v38 = vpop.eup %1292  ;;  %v700_v39 = vadd.f32 1.0, %v1291_v37 }
  0xf7   : > { %v702_v40 = vmul.f32 %v1293_v38, %v699_v36  ;;  %vm707_vm0 = vweird.f32 %v1293_v38 }
  0xf8   : > { %1294 = vrcp.f32 %v700_v39  ;;  %vm708_vm2 = vmor %vm706_vm1, %vm707_vm0  ;;  %v727_v52 = vand.u32 2147483648, %v700_v39  ;;  %v725_v54 = vand.u32 2147483647, %v700_v39  ;;  %vm721_vm5 = vweird.f32 %v700_v39 }
  0xf9   : > { %v703_v41 = vsub.f32 1.0, %v702_v40 }
  0xfa   : > { %v728_v58 = vor.u32 1.1754944e-38, %v727_v52  ;;  %vm726_vm7 = vcmp.eq.f32.partialorder %v725_v54, 8.507059e+37 }
  0xfb   : > { %v704_v42 = vmul.f32 %v1293_v38, %v703_v41 }
  0xfd   : > { %v705_v44 = vadd.f32 %v1293_v38, %v704_v42 }
  0xfe   : > { %v1295_v45 = vpop.eup %1294 }
  0xff   : > { %v717_v48 = vmul.f32 %v1295_v45, %v700_v39  ;;  %v709_v49 = vsel %vm708_vm2, %v1293_v38, %v705_v44  ;;  %vm722_vm4 = vweird.f32 %v1295_v45 }
 0x100   : > { %v714_v56 = vsel %vm711_vm3, %v713_v51, %v709_v49  ;;  %vm723_vm6 = vmor %vm721_vm5, %vm722_vm4 }
 0x101   : > { %v718_v50 = vsub.f32 1.0, %v717_v48  ;;  %v731_v60 = vmul.f32 %v714_v56, %v607_v28 }
 0x103   : > { %v719_v53 = vmul.f32 %v1295_v45, %v718_v50  ;;  %v733_v2 = vmul.f32 %v731_v60, %v689_v62 }
 0x105   : > { %v720_v57 = vadd.f32 %v1295_v45, %v719_v53 }
 0x107   : > { %v724_v61 = vsel %vm723_vm6, %v1295_v45, %v720_v57 }
 0x108   : > { %v729_v63 = vsel %vm726_vm7, %v728_v58, %v724_v61 }
 0x109   : > { %v732_v0 = vmul.f32 %v729_v63, %v609_v33 }
 0x10b   : > { %v734_v3 = vmul.f32 %v732_v0, %v691_v1 }
 0x10d   : > { %v735_v4 = vpack.c.bf16 %v734_v3, %v733_v2 }
 0x10f   : > { %810 = vmatmul.bf16.vlgmr.msra.gmra.mxu2 %v735_v4 }
 0x192   : > { %v811_v6 = vpop.f32.mrf.mxu2 }
 0x193   : > { %v829_v7 = vadd.f32 %v1287_v5, %v811_v6 }
 0x197   : > { %834 = sbr.rel (%p1146_p3) target bundleno = 416 (0x1a0), region = 84 }
 0x19a   : > { %v813_v8 = vpop.f32.mrf.mxu2 }
 0x19b   : > { %v830_v9 = vadd.f32 %v1287_v5, %v813_v8 }
 0x19d   : > { %v1189_v10 = vpack.c.bf16 %v830_v9, %v829_v7 }
 0x19f   : > { %1190 = vst [vmem:[#allocation2] sm:$0xff] %v1189_v10  }
 0x1a0 PF: > { %p1147_p4 = scmp.ne.s32.totalorder %s1528_s27, 1 }
 0x1a2   : > { %842 = sbr.rel (%p1147_p4) target bundleno = 425 (0x1a9), region = 88 }
 0x1a7   : > { %843 = vst [vmem:[#allocation13] sm:$0xff] %v829_v7 }
 0x1a8   : > { %844 = vst [vmem:[#allocation13 + $0x8] sm:$0xff] %v830_v9 }
 0x1a9 PF: > { %p1227_p5 = scmp.eq.s32.totalorder %s1677_s19, 1  ;;  %s1847_s0 = sld [smem:[#allocation24_spill]] }
 0x1aa   : > { %s1543_s29 = smov [#allocation13]   ;;  %s1544_s13 = smov 128  }
 0x1ab   : > { %s853_s30 = sshll.u32 %s1543_s29, 4  ;;  %s1545_s1 = smov 8   ;;  %s854_s30 = int_to_ptr.vmem [resolvable:$true] %s853_s30 }
 0x1af   : > { %s855_s3 = sshll.u32 %s1847_s0, 4  ;;  %s856_s3 = int_to_ptr.hbm [resolvable:$true] %s855_s3 }
 0x1b0   : > { %1204 = dma.vmem_to_hbm [thread:$0]  (%p1227_p5), %s854_s30, 256, %s856_s3, [#allocation6], %s1544_s13, %s1544_s13, %s1545_s1  }
 0x1b1   : > { %1511 = dma.done.wait (%p1227_p5), [#allocation6], 256  }
 0x1b2   : > { %1513 = vsyncadd (%p1227_p5), [#allocation6], 4294967040 }
 0x1b3 PF: > { %s1848_s27 = sld [smem:[#allocation18_spill]]  ;;  %s1851_s24 = smov %s1520_s25 }
 0x1b4   : > { %s1849_s19 = sld [smem:[#allocation20_spill]]  ;;  %s1852_s25 = smov %s1524_s26 }
 0x1b5   : > { %s1850_s7 = sld [smem:[#allocation19_spill]] }
 0x1b9   : > { %s25_s29 = sadd.s32 1, %s1848_s27   ;;  %s1854_s27 = smov %s1532_s28 }
 0x1ba   : > { %p22_p6 = scmp.ge.s32.totalorder %s25_s29, 4   ;;  %s1853_s26 = smov %s1849_s19 }
 0x1bb   : > { %s1855_s28 = smov %s1850_s7 }
 0x1bc   :  { %24 = sbr.rel (!%p22_p6) target bundleno = 13 (0xd), region = 153 }
 0x1c1   :  { %872 = vsyncpa [#allocation5], 1 }
 0x1c2   :  { %874 = vsyncpa [#allocation5 + $0x1], 1 }
 0x1c3   :  { %875 = vsyncpa [#allocation8], 1 }
 0x1c4   :  { %877 = vsyncpa [#allocation8 + $0x1], 1 }
 0x1c5   :  { %878 = vsyncpa [#allocation11], 1 }
 0x1c6   :  { %880 = vsyncpa [#allocation11 + $0x1], 1 }
 0x1c7   :  { %881 = vsyncpa [#allocation6], 1 }
 0x1c8   :  { %883 = vsyncpa [#allocation6 + $0x1], 1 }

</bundles_post_ra>
